<compile_context>
chip_gen: v7x
topology: tpu7x:2x2x1
jax: 0.10.0
libtpu: 0.0.40
codegen_flags: <defaults>
</compile_context>

<pallas_src>
import jax
import jax.numpy as jnp
from jax import lax
from jax.experimental import pallas as pl
from jax.experimental.pallas import tpu as pltpu


# Contract the last dim of both operands: [1, H] . [tm, H]^T -> [1, tm]
_NT_DIMS = (((1,), (1,)), ((), ()))


def mlp_pred_dist_kernel(x_ref, w1_ref, b1_ref, w2_ref, b2_ref, o_ref):
    # Layer 1 on the MXU: bf16 x @ bf16 w1 with f32 accumulation.
    h = jnp.dot(x_ref[...], w1_ref[...], preferred_element_type=jnp.float32)  # [tm, H] f32
    # Bias + ReLU in f32 (VPU).
    h = jnp.maximum(h + b1_ref[...], 0.0)
    # Layer 2 as an NT contraction so the result is lane-major ([1, tm]):
    # avoids width-1 masked stores and a sublane->lane relayout.
    out_row = lax.dot_general(
        w2_ref[...], h.astype(jnp.bfloat16), _NT_DIMS,
        preferred_element_type=jnp.float32,
    )                                                                          # [1, tm] f32
    o_ref[...] = (out_row + b2_ref[0]).astype(o_ref.dtype)


def _round_up(x, m):
    return ((x + m - 1) // m) * m


def mlp_pred_dist(x, w1, b1, w2, b2, *, tm=None,
                  vmem_limit_bytes=48 * 1024 * 1024):
    """Pallas implementation of MLP_Pred_Dist.forward.

    x:  [N, 2H] float (cast to bf16 internally; pass bf16 to avoid the extra cast pass)
    w1: [2H, H] (linear1.weight transposed), b1: [H] or [1, H]
    w2: [1, H]  (native linear2.weight layout) or [H, 1], b2: scalar / [1] / [1, 1]
    returns: [N] float32  (== torch `.squeeze()` of the [N, 1] result)
    """
    N, two_h = x.shape
    H = w1.shape[1]
    assert w1.shape == (two_h, H)

    # bf16 operands for the layer-1 matmul (MXU-native, halves x HBM bytes).
    x_bf = x if x.dtype == jnp.bfloat16 else x.astype(jnp.bfloat16)
    w1_bf = w1 if w1.dtype == jnp.bfloat16 else w1.astype(jnp.bfloat16)
    b1_f = jnp.asarray(b1, jnp.float32).reshape(1, H)
    w2_bf = jnp.asarray(w2, jnp.float32).reshape(1, H).astype(jnp.bfloat16)
    b2_f = jnp.asarray(b2, jnp.float32).reshape(1)

    # Fixed row tile (never N): many grid steps -> pipelining + megacore sharding.
    # Multiple of 128 keeps the lane-dense output block aligned; cap so the x
    # double buffer stays well under v7x's 64 MiB VMEM.
    if tm is None:
        tm = 512
    tm = min(tm, _round_up(N, 128))
    tm = max(128, _round_up(tm, 128))
    while tm > 128 and 2 * tm * two_h * 2 > 24 * 1024 * 1024:
        tm = _round_up(tm // 2, 128)

    num_blocks = pl.cdiv(N, tm)
    n_pad = num_blocks * tm

    out = pl.pallas_call(
        mlp_pred_dist_kernel,
        out_shape=jax.ShapeDtypeStruct((1, n_pad), jnp.float32),
        grid=(num_blocks,),
        in_specs=[
            pl.BlockSpec((tm, two_h), lambda i: (i, 0)),           # x rows (streamed)
            pl.BlockSpec((two_h, H), lambda i: (0, 0)),            # w1 (resident)
            pl.BlockSpec((1, H), lambda i: (0, 0)),                # b1 (resident)
            pl.BlockSpec((1, H), lambda i: (0, 0)),                # w2 row (resident)
            pl.BlockSpec(memory_space=pltpu.MemorySpace.SMEM),     # b2 scalar
        ],
        out_specs=pl.BlockSpec((1, tm), lambda i: (0, i)),         # lane-dense output
        compiler_params=pltpu.CompilerParams(
            dimension_semantics=("parallel",),
            vmem_limit_bytes=vmem_limit_bytes,
        ),
    )(x_bf, w1_bf, b1_f, w2_bf, b2_f)

    # torch `.squeeze()`: [N, 1] -> [N]; drop the padded tail of the last block.
    return out[0, :N]


def init_params(key, hidden_channels):
    """Deterministic init mimicking nn.Linear default U(-1/sqrt(fan_in), 1/sqrt(fan_in))."""
    k1, k2, k3, k4 = jax.random.split(key, 4)
    in1 = 2 * hidden_channels
    bound1 = 1.0 / jnp.sqrt(in1)
    w1 = jax.random.uniform(k1, (in1, hidden_channels), jnp.float32, -bound1, bound1)
    b1 = jax.random.uniform(k2, (1, hidden_channels), jnp.float32, -bound1, bound1)
    in2 = hidden_channels
    bound2 = 1.0 / jnp.sqrt(in2)
    w2 = jax.random.uniform(k3, (1, in2), jnp.float32, -bound2, bound2)  # torch linear2.weight layout
    b2 = jax.random.uniform(k4, (1,), jnp.float32, -bound2, bound2)
    return w1, b1, w2, b2


def _ref_f32(x, w1, b1, w2, b2):
    h = jnp.maximum(x @ w1 + b1, 0.0)
    return (h @ jnp.reshape(w2, (-1, 1)) + b2.reshape(1, 1)).reshape(-1)


def _ref_bf16_matched(x, w1, b1, w2, b2):
    # Same bf16 casts / f32 accumulation as the kernel.
    h = jnp.dot(x.astype(jnp.bfloat16), w1.astype(jnp.bfloat16),
                preferred_element_type=jnp.float32) + b1
    h = jnp.maximum(h, 0.0).astype(jnp.bfloat16)
    w2b = jnp.reshape(w2, (1, -1)).astype(jnp.bfloat16)
    out = jnp.dot(h, w2b.T, preferred_element_type=jnp.float32) + b2.reshape(1, 1)
    return out.reshape(-1)


if __name__ == "__main__":
    hidden_channels = 32
    key = jax.random.PRNGKey(0)
    kx, kp, kx2 = jax.random.split(key, 3)
    w1, b1, w2, b2 = init_params(kp, hidden_channels)

    # Case 1: N divisible by the tile -> multi-block grid (2 blocks at tm=512).
    N = 1024
    x = jax.random.normal(kx, (N, 2 * hidden_channels), jnp.float32)
    y = mlp_pred_dist(x, w1, b1, w2, b2)
    jax.block_until_ready(y)
    assert y.shape == (N,)
    assert jnp.allclose(y, _ref_bf16_matched(x, w1, b1, w2, b2), atol=2e-3, rtol=2e-3)
    assert jnp.allclose(y, _ref_f32(x, w1, b1, w2, b2), atol=6e-2, rtol=6e-2)

    # Case 2: ragged N (not a multiple of tm) -> partial last block + output slice.
    N2 = 777
    x2 = jax.random.normal(kx2, (N2, 2 * hidden_channels), jnp.float32)
    y2 = mlp_pred_dist(x2, w1, b1, w2, b2)
    jax.block_until_ready(y2)
    assert y2.shape == (N2,)
    assert jnp.allclose(y2, _ref_bf16_matched(x2, w1, b1, w2, b2), atol=2e-3, rtol=2e-3)

    print("KERNEL_OK")
</pallas_src>

<mosaic_0001>
module attributes {stable_mosaic.version = 11 : i64} {
  func.func @mlp_pred_dist_kernel(%arg0: i32, %arg1: memref<512x64xbf16, #tpu.memory_space<vmem>>, %arg2: memref<64x32xbf16, #tpu.memory_space<vmem>>, %arg3: memref<1x32xf32, #tpu.memory_space<vmem>>, %arg4: memref<1x32xbf16, #tpu.memory_space<vmem>>, %arg5: memref<1xf32, #tpu.memory_space<smem>>, %arg6: memref<1x512xf32, #tpu.memory_space<vmem>>) attributes {dimension_semantics = [#tpu.dimension_semantics<parallel>], iteration_bounds = array<i64: 2>, scalar_prefetch = 0 : i64, scratch_operands = 0 : i64, tpu.core_type = #tpu.core_type<tc>, window_params = [{transform_indices = @transform_0, window_bounds = array<i64: 512, 64>}, {pipeline_mode = #tpu.pipeline_mode<synchronous>, transform_indices = @transform_1, window_bounds = array<i64: 64, 32>}, {pipeline_mode = #tpu.pipeline_mode<synchronous>, transform_indices = @transform_2, window_bounds = array<i64: 1, 32>}, {pipeline_mode = #tpu.pipeline_mode<synchronous>, transform_indices = @transform_3, window_bounds = array<i64: 1, 32>}, {transform_indices = @transform_4, window_bounds = array<i64: 1>}, {transform_indices = @transform_5, window_bounds = array<i64: 1, 512>}]} {
    %c0 = arith.constant 0 : index
    %c0_0 = arith.constant 0 : index
    %0 = vector.load %arg1[%c0, %c0_0] : memref<512x64xbf16, #tpu.memory_space<vmem>>, vector<512x64xbf16>
    %c0_1 = arith.constant 0 : index
    %c0_2 = arith.constant 0 : index
    %1 = vector.load %arg2[%c0_1, %c0_2] : memref<64x32xbf16, #tpu.memory_space<vmem>>, vector<64x32xbf16>
    %cst = arith.constant dense<0.000000e+00> : vector<512x32xf32>
    %2 = tpu.matmul %0, %1, %cst {dimension_numbers = #tpu.dot_dimension_numbers<[1], [0], [0], [1], [0, 0, 1, 1], [], []>} : vector<512x64xbf16>, vector<64x32xbf16>, vector<512x32xf32> -> vector<512x32xf32>
    %c0_3 = arith.constant 0 : index
    %c0_4 = arith.constant 0 : index
    %3 = vector.load %arg3[%c0_3, %c0_4] : memref<1x32xf32, #tpu.memory_space<vmem>>, vector<1x32xf32>
    %4 = vector.broadcast %3 : vector<1x32xf32> to vector<512x32xf32>
    %5 = arith.addf %2, %4 : vector<512x32xf32>
    %cst_5 = arith.constant 0.000000e+00 : f32
    %6 = vector.broadcast %cst_5 : f32 to vector<512x32xf32>
    %7 = arith.maximumf %5, %6 : vector<512x32xf32>
    %c0_6 = arith.constant 0 : index
    %c0_7 = arith.constant 0 : index
    %8 = vector.load %arg4[%c0_6, %c0_7] : memref<1x32xbf16, #tpu.memory_space<vmem>>, vector<1x32xbf16>
    %9 = arith.truncf %7 : vector<512x32xf32> to vector<512x32xbf16>
    %cst_8 = arith.constant dense<0.000000e+00> : vector<1x512xf32>
    %10 = tpu.matmul %8, %9, %cst_8 {dimension_numbers = #tpu.dot_dimension_numbers<[1], [1], [0], [0], [0, 0, 1, 0], [], []>} : vector<1x32xbf16>, vector<512x32xbf16>, vector<1x512xf32> -> vector<1x512xf32>
    %c0_9 = arith.constant 0 : index
    %11 = memref.load %arg5[%c0_9] : memref<1xf32, #tpu.memory_space<smem>>
    %12 = vector.broadcast %11 : f32 to vector<1x512xf32>
    %13 = arith.addf %10, %12 : vector<1x512xf32>
    %c0_10 = arith.constant 0 : index
    %c0_11 = arith.constant 0 : index
    %14 = vector.load %arg6[%c0_10, %c0_11] : memref<1x512xf32, #tpu.memory_space<vmem>>, vector<1x512xf32>
    tpu.vector_store %arg6[%c0_10, %c0_11], %13 {strides = array<i32>} : memref<1x512xf32, #tpu.memory_space<vmem>>, vector<1x512xf32>,
    return
  }
  func.func @transform_0(%arg0: i32) -> (i32, i32) {
    %c0_i32 = arith.constant 0 : i32
    %c0_i32_0 = arith.constant 0 : i32
    return %arg0, %c0_i32 : i32, i32
  }
  func.func @transform_1(%arg0: i32) -> (i32, i32) {
    %c0_i32 = arith.constant 0 : i32
    %c0_i32_0 = arith.constant 0 : i32
    %c0_i32_1 = arith.constant 0 : i32
    return %c0_i32, %c0_i32_0 : i32, i32
  }
  func.func @transform_2(%arg0: i32) -> (i32, i32) {
    %c0_i32 = arith.constant 0 : i32
    %c0_i32_0 = arith.constant 0 : i32
    %c0_i32_1 = arith.constant 0 : i32
    return %c0_i32, %c0_i32_0 : i32, i32
  }
  func.func @transform_3(%arg0: i32) -> (i32, i32) {
    %c0_i32 = arith.constant 0 : i32
    %c0_i32_0 = arith.constant 0 : i32
    %c0_i32_1 = arith.constant 0 : i32
    return %c0_i32, %c0_i32_0 : i32, i32
  }
  func.func @transform_4(%arg0: i32) -> i32 {
    %c0_i32 = arith.constant 0 : i32
    %c0_i32_0 = arith.constant 0 : i32
    return %c0_i32 : i32
  }
  func.func @transform_5(%arg0: i32) -> (i32, i32) {
    %c0_i32 = arith.constant 0 : i32
    %c0_i32_0 = arith.constant 0 : i32
    return %c0_i32, %arg0 : i32, i32
  }
}

</mosaic_0001>

<bundles_post_ra>
// kernel: tpu_custom_call.1
= control target key start
LH: loop header
LB: loop body
LE: loop exit
PB: predicated region body
PF: predicated region fallthrough
CT: control target
= control target key end

     0   :  { %s2024_s0 = inlined_call_operand.vmem [shape: bf16[1024,64], index: 0, kind: input, shape index: {}]   ;;  %s2025_s1 = inlined_call_operand.vmem [shape: bf16[64,32], index: 1, kind: input, shape index: {}]   ;;  %s2026_s2 = inlined_call_operand.vmem [shape: f32[1,32], index: 2, kind: input, shape index: {}]   ;;  %s2027_s3 = inlined_call_operand.vmem [shape: bf16[1,32], index: 3, kind: input, shape index: {}]   ;;  %s2028_s4 = inlined_call_operand.<no memory space> [shape: f32[1], index: 4, kind: input, shape index: {}]   ;;  %s2029_s5 = inlined_call_operand.hbm [shape: f32[1,1024], index: 5, kind: output, shape index: {}]  }
   0x1   :  { %10 = sst [smem:[#allocation2]] %s2028_s4 }
   0x2   :  { %11 = vsyncpa [#allocation4], 0 }
   0x3   :  { %13 = vsyncpa [#allocation4 + $0x1], 0  ;;  %s1685_s20 = smov 0   ;;  %s1687_s21 = smov 0  }
   0x4   :  { %s1689_s22 = smov 0   ;;  %s1691_s23 = smov 0  }
   0x5 LB: > { %s1265_s4 = sadd.s32 4294967295, %s1648_s23   ;;  %s1266_s24 = sadd.s32 4294967294, %s1648_s23   ;;  %s1648_s23 = sphi %s1691_s23, %s2035_s23   ;;  %s1644_s22 = sphi %s1689_s22, %s2034_s22   ;;  %s1640_s21 = sphi %s1687_s21, %s2033_s21   ;;  %s1636_s20 = sphi %s1685_s20, %s2032_s20  }
   0x6   : > { %s1708_s25 = sadd.s32 1, %s1648_s23   ;;  %s136_s26 = sadd.s32 1, %s1644_s22 }
   0x7   : > { %s133_s27 = ssub.s32 %s1648_s23, %s1708_s25  ;;  %p146_p0 = scmp.ne.s32.totalorder %s1644_s22, %s1640_s21 }
   0x8   : > { %p134_p1 = scmp.eq.s32.totalorder %s133_s27, 0  ;;  %p147_p2 = scmp.eq.s32.totalorder %s1265_s4, 1 }
   0x9   : > { %p152_p3 = scmp.ne.s32.totalorder %s1640_s21, %s1636_s20  ;;  %p153_p4 = scmp.eq.s32.totalorder %s1266_s24, 1 }
   0xa   : > { %s1718_s28 = scalar_select %p134_p1, %s1644_s22, %s136_s26  }
   0xb   : > { %p1720_p5 = por %p147_p2, %p146_p0  ;;  %p1724_p6 = por %p153_p4, %p152_p3 }
   0xc   : > { %p1269_p7 = scmp.ge.s32.totalorder %s1648_s23, 1  ;;  %p192_p8 = scmp.lt.s32.totalorder %s1648_s23, 3 }
   0xe   : > { %p193_p9 = pnand %p1269_p7, %p192_p8 }
   0xf   : > { %v1550_v0 = vld [vmem:[%s2025_s1] sm:$0xff] (!%p193_p9)   ;;  %s1733_s8 = sshll.u32 (!%p193_p9), %s1265_s4, 6  ;;  %v1551_v1 = vld [vmem:[%s2025_s1 + $0x8] sm:$0xff] (!%p193_p9)   ;;  %v1552_v2 = vld [vmem:[%s2025_s1 + $0x10] sm:$0xff] (!%p193_p9)   ;;  %vm491_vm0 = vcmask (!%p193_p9), 523264   ;;  %vm976_vm1 = vcmask (!%p193_p9), 261120  }
  0x10   : > { %196 = sbr.rel (%p193_p9) target bundleno = 650 (0x28a), region = 40  ;;  %p221_p10 = scmp.lt.s32.totalorder (!%p193_p9), %s1733_s8, 127  ;;  %1422 = vmatprep.subr.bf16.mxu0 (!%p193_p9), %v1550_v0  ;;  %v1553_v4 = vld [vmem:[%s2025_s1 + $0x18] sm:$0xff] (!%p193_p9)   ;;  %v1818_v36 = vld [vmem:[%s2027_s3] sm:$0x1] (!%p193_p9) }
  0x11   : > { %1423 = vmatpush3.bf16.msra.mxu0 (!%p193_p9), %v1550_v0  ;;  %1402 = vmatprep.mubr.msk.bf16.mxu1 (!%p193_p9), %vm976_vm1, %v1818_v36  ;;  %v1825_v37 = vld [vmem:[%s2026_s2] ss:$0 sm:$0xff] (!%p193_p9)  ;;  %s974_s6 = sld [smem:[#allocation2]] (!%p193_p9)  ;;  %s217_s7 = sand.u32 (!%p193_p9), 1, %s1640_s21  }
  0x12   : > { %1424 = vmatprep.subr.bf16.mxu0 (!%p193_p9), %v1551_v1  ;;  %s1270_s9 = sshll.u32 (!%p193_p9), %s217_s7, 2  ;;  %s1193_s15 = scalar_lea.sflag (!%p193_p9), [#allocation4], %s217_s7 }
  0x13   : > { %s219_s10 = scalar_lea.vmem (!%p193_p9), [#allocation3], %s1270_s9 }
  0x15   : > { %1425 = vmatpush3.bf16.msra.mxu0 (!%p193_p9), %v1551_v1 }
  0x16   : > { %1426 = vmatprep.subr.bf16.mxu0 (!%p193_p9), %v1552_v2 }
  0x17   : > { %s222_s11 = scalar_select %p221_p10, %s1733_s8, 127 }
  0x19   : > { %s1272_s14 = sshll.u32 %s222_s11, 2  ;;  %1427 = vmatpush3.bf16.msra.mxu0 %v1552_v2  ;;  %s1207_s11 = sshll.u32 %s219_s10, 4  ;;  %s1984_s11 = int_to_ptr.vmem [resolvable:$true] %s1207_s11 }
  0x1a   : > { %s1746_s17 = scalar_lea.vmem %s2024_s0, %s1272_s14  ;;  %1428 = vmatprep.subr.bf16.mxu0 %v1553_v4  ;;  %s1982_s14 = scalar_lea.hbm %s2029_s5, %s1733_s8 }
  0x1b   : > { %v1554_v3 = vld [vmem:[%s1746_s17] sm:$0xff]   ;;  %v1555_v5 = vld [vmem:[%s1746_s17 + $0x8] sm:$0xff]   ;;  %v1556_v6 = vld [vmem:[%s1746_s17 + $0x10] sm:$0xff]   ;;  %s1586_s16 = scalar_lea.vmem %s1984_s11, 64 }
  0x1c   : > { %1430 = vmatprep.mubr.msk.bf16.mxu0 %vm491_vm0, %v1554_v3  ;;  %v1557_v7 = vld [vmem:[%s1746_s17 + $0x18] sm:$0xff]   ;;  %v1558_v8 = vld [vmem:[%s1746_s17 + $0x20] sm:$0xff]   ;;  %v1559_v9 = vld [vmem:[%s1746_s17 + $0x28] sm:$0xff]   ;;  %p1587_p11 = scmp.ne.s32.totalorder %s1984_s11, %s1586_s16 }
  0x1d   : > { %1429 = vmatpush3.bf16.msra.mxu0 %v1553_v4  ;;  %v1560_v10 = vld [vmem:[%s1746_s17 + $0x30] sm:$0xff]   ;;  %v1561_v11 = vld [vmem:[%s1746_s17 + $0x38] sm:$0xff]   ;;  %v1562_v12 = vld [vmem:[%s1746_s17 + $0x40] sm:$0xff]  }
  0x1e   : > { %v1563_v13 = vld [vmem:[%s1746_s17 + $0x48] sm:$0xff]   ;;  %v1564_v14 = vld [vmem:[%s1746_s17 + $0x50] sm:$0xff]   ;;  %v1565_v15 = vld [vmem:[%s1746_s17 + $0x58] sm:$0xff]   ;;  %p1588_p12 = pnand %p1587_p11, %p1720_p5 }
  0x1f   : > { %v1566_v16 = vld [vmem:[%s1746_s17 + $0x60] sm:$0xff]   ;;  %v1567_v17 = vld [vmem:[%s1746_s17 + $0x68] sm:$0xff]   ;;  %v1568_v18 = vld [vmem:[%s1746_s17 + $0x70] sm:$0xff]  }
  0x20   : > { %1431 = vmatmul.mubr.msk.bf16.vlgmr.msra.gmra.mrb[0].mxu0 %vm491_vm0, %v1555_v5  ;;  %v1569_v19 = vld [vmem:[%s1746_s17 + $0x78] sm:$0xff]   ;;  %v1570_v20 = vld [vmem:[%s1746_s17 + $0x80] sm:$0xff]   ;;  %v1571_v21 = vld [vmem:[%s1746_s17 + $0x88] sm:$0xff]   ;;  %p1589_p13 = pneg %p1588_p12 }
  0x21   : > { %1434 = vmatprep.mubr.msk.bf16.mxu0 %vm491_vm0, %v1556_v6  ;;  %v1572_v22 = vld [vmem:[%s1746_s17 + $0x90] sm:$0xff]   ;;  %v1573_v23 = vld [vmem:[%s1746_s17 + $0x98] sm:$0xff]   ;;  %v1574_v24 = vld [vmem:[%s1746_s17 + $0xa0] sm:$0xff]  }
  0x22   : > { %v1575_v25 = vld [vmem:[%s1746_s17 + $0xa8] sm:$0xff]   ;;  %v1576_v26 = vld [vmem:[%s1746_s17 + $0xb0] sm:$0xff]   ;;  %v1577_v27 = vld [vmem:[%s1746_s17 + $0xb8] sm:$0xff]  }
  0x23   : > { %v1578_v28 = vld [vmem:[%s1746_s17 + $0xc0] sm:$0xff]   ;;  %v1579_v29 = vld [vmem:[%s1746_s17 + $0xc8] sm:$0xff]   ;;  %v1580_v30 = vld [vmem:[%s1746_s17 + $0xd0] sm:$0xff]  }
  0x24   : > { %v1581_v31 = vld [vmem:[%s1746_s17 + $0xd8] sm:$0xff]   ;;  %v1582_v32 = vld [vmem:[%s1746_s17 + $0xe0] sm:$0xff]   ;;  %v1583_v33 = vld [vmem:[%s1746_s17 + $0xe8] sm:$0xff]  }
  0x25   : > { %v1584_v34 = vld [vmem:[%s1746_s17 + $0xf0] sm:$0xff]   ;;  %v1585_v35 = vld [vmem:[%s1746_s17 + $0xf8] sm:$0xff]   ;;  %s1651_s17 = smov [#allocation3]  }
  0x26   : > { %s1590_s18 = sshll.u32 %s1651_s17, 4  ;;  %s1591_s18 = int_to_ptr.vmem [resolvable:$false] %s1590_s18 }
  0x27   : > { %s1592_s19 = scalar_lea.vmem %s1591_s18, 128  ;;  %p1593_p0 = scmp.lt.s32.totalorder %s1984_s11, %s1591_s18 }
  0x28   : > { %1435 = vmatmul.mubr.msk.bf16.gmra.mrb[4].mxu0 %vm491_vm0, %v1557_v7  ;;  %p1594_p1 = scmp.lt.s32.totalorder %s1592_s19, %s1586_s16 }
  0x29   : > { %1438 = vmatprep.mubr.msk.bf16.mxu0 %vm491_vm0, %v1558_v8 }
  0x2a   : > { %p1595_p2 = por %p1594_p1, %p1593_p0 }
  0x2c   : > { %p1596_p3 = pnand %p1595_p2, %p1589_p13 }
  0x30   : > { %1439 = vmatmul.mubr.msk.bf16.gmra.mrb[8].mxu0 %vm491_vm0, %v1559_v9 }
  0x31   : > { %1442 = vmatprep.mubr.msk.bf16.mxu0 %vm491_vm0, %v1560_v10 }
  0x38   : > { %1443 = vmatmul.mubr.msk.bf16.gmra.mrb[12].mxu0 %vm491_vm0, %v1561_v11 }
  0x39   : > { %1446 = vmatprep.mubr.msk.bf16.mxu0 %vm491_vm0, %v1562_v12 }
  0x40   : > { %1447 = vmatmul.mubr.msk.bf16.gmra.mrb[16].mxu0 %vm491_vm0, %v1563_v13 }
  0x41   : > { %1450 = vmatprep.mubr.msk.bf16.mxu0 %vm491_vm0, %v1564_v14 }
  0x48   : > { %1451 = vmatmul.mubr.msk.bf16.gmra.mrb[20].mxu0 %vm491_vm0, %v1565_v15 }
  0x49   : > { %1454 = vmatprep.mubr.msk.bf16.mxu0 %vm491_vm0, %v1566_v16 }
  0x50   : > { %1455 = vmatmul.mubr.msk.bf16.gmra.mrb[24].mxu0 %vm491_vm0, %v1567_v17 }
  0x51   : > { %1458 = vmatprep.mubr.msk.bf16.mxu0 %vm491_vm0, %v1568_v18 }
  0x58   : > { %1459 = vmatmul.mubr.msk.bf16.gmra.mrb[28].mxu0 %vm491_vm0, %v1569_v19 }
  0x59   : > { %1462 = vmatprep.mubr.msk.bf16.mxu0 %vm491_vm0, %v1570_v20 }
  0x60   : > { %1463 = vmatmul.mubr.msk.bf16.gmra.mrb[32].mxu0 %vm491_vm0, %v1571_v21 }
  0x61   : > { %1466 = vmatprep.mubr.msk.bf16.mxu0 %vm491_vm0, %v1572_v22 }
  0x68   : > { %1467 = vmatmul.mubr.msk.bf16.gmra.mrb[36].mxu0 %vm491_vm0, %v1573_v23 }
  0x69   : > { %1470 = vmatprep.mubr.msk.bf16.mxu0 %vm491_vm0, %v1574_v24 }
  0x70   : > { %1471 = vmatmul.mubr.msk.bf16.gmra.mrb[40].mxu0 %vm491_vm0, %v1575_v25 }
  0x71   : > { %1474 = vmatprep.mubr.msk.bf16.mxu0 %vm491_vm0, %v1576_v26 }
  0x78   : > { %1475 = vmatmul.mubr.msk.bf16.gmra.mrb[44].mxu0 %vm491_vm0, %v1577_v27 }
  0x79   : > { %1478 = vmatprep.mubr.msk.bf16.mxu0 %vm491_vm0, %v1578_v28 }
  0x80   : > { %1479 = vmatmul.mubr.msk.bf16.gmra.mrb[48].mxu0 %vm491_vm0, %v1579_v29 }
  0x81   : > { %1482 = vmatprep.mubr.msk.bf16.mxu0 %vm491_vm0, %v1580_v30 }
  0x88   : > { %1483 = vmatmul.mubr.msk.bf16.gmra.mrb[52].mxu0 %vm491_vm0, %v1581_v31 }
  0x89   : > { %1486 = vmatprep.mubr.msk.bf16.mxu0 %vm491_vm0, %v1582_v32 }
  0x90   : > { %1487 = vmatmul.mubr.msk.bf16.gmra.mrb[56].mxu0 %vm491_vm0, %v1583_v33 }
  0x91   : > { %1490 = vmatprep.mubr.msk.bf16.mxu0 %vm491_vm0, %v1584_v34 }
  0x98   : > { %1491 = vmatmul.mubr.msk.bf16.gmra.mrb[60].mxu0 %vm491_vm0, %v1585_v35 }
  0xf3   : > { %v1432_v38 = vpop.f32.mrb[0].mxu0 }
  0xf4   : > { %v631_v39 = vadd.f32 %v1432_v38, %v1825_v37  ;;  %v622_v40 = vpop.f32.mrb[1].mxu0 }
  0xf5   : > { %v623_v41 = vadd.f32 %v1825_v37, %v622_v40  ;;  %v1433_v42 = vpop.f32.mrb[2].mxu0 }
  0xf6   : > { %v634_v43 = vadd.f32 %v1433_v42, %v1825_v37  ;;  %v625_v44 = vpop.f32.mrb[3].mxu0  ;;  %v879_v46 = vmax.f32 %v631_v39, 0.0 }
  0xf7   : > { %v626_v45 = vadd.f32 %v1825_v37, %v625_v44  ;;  %v877_v48 = vmax.f32 %v623_v41, 0.0 }
  0xf8   : > { %v880_v47 = vmax.f32 %v634_v43, 0.0 }
  0xf9   : > { %v878_v49 = vmax.f32 %v626_v45, 0.0 }
  0xfa   : > { %v1831_v50 = vpack.c.bf16 %v880_v47, %v879_v46 }
  0xfb   : > { %v1436_v51 = vpop.f32.mrb[4].mxu0  ;;  %v942_v52 = vpack.c.bf16 %v878_v49, %v877_v48 }
  0xfc   : > { %v647_v53 = vadd.f32 %v1436_v51, %v1825_v37  ;;  %v638_v54 = vpop.f32.mrb[5].mxu0 }
  0xfd   : > { %v639_v55 = vadd.f32 %v1825_v37, %v638_v54  ;;  %v1437_v56 = vpop.f32.mrb[6].mxu0 }
  0xfe   : > { %v650_v57 = vadd.f32 %v1437_v56, %v1825_v37  ;;  %v641_v58 = vpop.f32.mrb[7].mxu0  ;;  %v883_v60 = vmax.f32 %v647_v53, 0.0  ;;  %v981_v53 = vsel %vm976_vm1, %v942_v52, 0 }
  0xff   : > { %v642_v59 = vadd.f32 %v1825_v37, %v641_v58  ;;  %v881_v62 = vmax.f32 %v639_v55, 0.0 }
 0x100   : > { %v884_v61 = vmax.f32 %v650_v57, 0.0 }
 0x101   : > { %v882_v63 = vmax.f32 %v642_v59, 0.0 }
 0x102   : > { %v1837_v0 = vpack.c.bf16 %v884_v61, %v883_v60 }
 0x103   : > { %v1839_v1 = vpack.c.bf16 %v882_v63, %v881_v62  ;;  %v1440_v2 = vpop.f32.mrb[8].mxu0 }
 0x104   : > { %v663_v3 = vadd.f32 %v1440_v2, %v1825_v37  ;;  %v654_v4 = vpop.f32.mrb[9].mxu0 }
 0x105   : > { %v655_v5 = vadd.f32 %v1825_v37, %v654_v4  ;;  %v1441_v6 = vpop.f32.mrb[10].mxu0 }
 0x106   : > { %v666_v7 = vadd.f32 %v1441_v6, %v1825_v37  ;;  %v657_v8 = vpop.f32.mrb[11].mxu0  ;;  %v887_v10 = vmax.f32 %v663_v3, 0.0 }
 0x107   : > { %v658_v9 = vadd.f32 %v1825_v37, %v657_v8  ;;  %v885_v12 = vmax.f32 %v655_v5, 0.0  ;;  %v984_v5 = vsel %vm976_vm1, %v1831_v50, 0 }
 0x108   : > { %v888_v11 = vmax.f32 %v666_v7, 0.0 }
 0x109   : > { %v886_v13 = vmax.f32 %v658_v9, 0.0 }
 0x10a   : > { %v1845_v14 = vpack.c.bf16 %v888_v11, %v887_v10 }
 0x10b   : > { %v1847_v15 = vpack.c.bf16 %v886_v13, %v885_v12  ;;  %v1444_v16 = vpop.f32.mrb[12].mxu0 }
 0x10c   : > { %v679_v17 = vadd.f32 %v1444_v16, %v1825_v37  ;;  %v670_v18 = vpop.f32.mrb[13].mxu0 }
 0x10d   : > { %v671_v19 = vadd.f32 %v1825_v37, %v670_v18  ;;  %v1445_v20 = vpop.f32.mrb[14].mxu0 }
 0x10e   : > { %v682_v21 = vadd.f32 %v1445_v20, %v1825_v37  ;;  %v673_v22 = vpop.f32.mrb[15].mxu0  ;;  %v891_v24 = vmax.f32 %v679_v17, 0.0 }
 0x10f   : > { %v674_v23 = vadd.f32 %v1825_v37, %v673_v22  ;;  %v889_v26 = vmax.f32 %v671_v19, 0.0 }
 0x110   : > { %v892_v25 = vmax.f32 %v682_v21, 0.0  ;;  %v987_v21 = vsel %vm976_vm1, %v1839_v1, 0 }
 0x111   : > { %v890_v27 = vmax.f32 %v674_v23, 0.0 }
 0x112   : > { %v1853_v28 = vpack.c.bf16 %v892_v25, %v891_v24 }
 0x113   : > { %v1855_v29 = vpack.c.bf16 %v890_v27, %v889_v26  ;;  %v1448_v30 = vpop.f32.mrb[16].mxu0 }
 0x114   : > { %v695_v31 = vadd.f32 %v1448_v30, %v1825_v37  ;;  %v686_v32 = vpop.f32.mrb[17].mxu0 }
 0x115   : > { %v687_v33 = vadd.f32 %v1825_v37, %v686_v32  ;;  %v1449_v34 = vpop.f32.mrb[18].mxu0 }
 0x116   : > { %v698_v35 = vadd.f32 %v1449_v34, %v1825_v37  ;;  %v689_v38 = vpop.f32.mrb[19].mxu0  ;;  %v895_v40 = vmax.f32 %v695_v31, 0.0 }
 0x117   : > { %v690_v39 = vadd.f32 %v1825_v37, %v689_v38  ;;  %v893_v42 = vmax.f32 %v687_v33, 0.0 }
 0x118   : > { %v896_v41 = vmax.f32 %v698_v35, 0.0 }
 0x119   : > { %v894_v43 = vmax.f32 %v690_v39, 0.0  ;;  %v990_v39 = vsel %vm976_vm1, %v1837_v0, 0 }
 0x11a   : > { %v951_v44 = vpack.c.bf16 %v896_v41, %v895_v40 }
 0x11b   : > { %v1452_v45 = vpop.f32.mrb[20].mxu0  ;;  %v950_v46 = vpack.c.bf16 %v894_v43, %v893_v42 }
 0x11c   : > { %v711_v47 = vadd.f32 %v1452_v45, %v1825_v37  ;;  %v702_v48 = vpop.f32.mrb[21].mxu0 }
 0x11d   : > { %v703_v49 = vadd.f32 %v1825_v37, %v702_v48  ;;  %v1453_v51 = vpop.f32.mrb[22].mxu0  ;;  %1494 = vmatprep.subr.msk.bf16.mxu1 %vm976_vm1, %v950_v46 }
 0x11e   : > { %v714_v54 = vadd.f32 %v1453_v51, %v1825_v37  ;;  %v705_v55 = vpop.f32.mrb[23].mxu0  ;;  %1387 = vmatpush3.bf16.xpose.msra.mxu1 %v981_v53  ;;  %v899_v57 = vmax.f32 %v711_v47, 0.0 }
 0x11f   : > { %v706_v56 = vadd.f32 %v1825_v37, %v705_v55  ;;  %1495 = vmatprep.subr.msk.bf16.mxu1 %vm976_vm1, %v951_v44  ;;  %v897_v59 = vmax.f32 %v703_v49, 0.0  ;;  %v993_v55 = vsel %vm976_vm1, %v1847_v15, 0 }
 0x120   : > { %v900_v58 = vmax.f32 %v714_v54, 0.0 }
 0x121   : > { %v898_v60 = vmax.f32 %v706_v56, 0.0 }
 0x122   : > { %v953_v61 = vpack.c.bf16 %v900_v58, %v899_v57 }
 0x123   : > { %v952_v62 = vpack.c.bf16 %v898_v60, %v897_v59  ;;  %v1456_v63 = vpop.f32.mrb[24].mxu0 }
 0x124   : > { %v727_v2 = vadd.f32 %v1456_v63, %v1825_v37  ;;  %v718_v3 = vpop.f32.mrb[25].mxu0 }
 0x125   : > { %v719_v52 = vadd.f32 %v1825_v37, %v718_v3  ;;  %v1457_v4 = vpop.f32.mrb[26].mxu0 }
 0x126   : > { %v730_v6 = vadd.f32 %v1457_v4, %v1825_v37  ;;  %v721_v7 = vpop.f32.mrb[27].mxu0  ;;  %1389 = vmatpush3.bf16.xpose.msra.mxu1 %v984_v5  ;;  %v903_v9 = vmax.f32 %v727_v2, 0.0 }
 0x127   : > { %v722_v8 = vadd.f32 %v1825_v37, %v721_v7  ;;  %1496 = vmatprep.subr.msk.bf16.mxu1 %vm976_vm1, %v952_v62  ;;  %v901_v11 = vmax.f32 %v719_v52, 0.0 }
 0x128   : > { %v904_v10 = vmax.f32 %v730_v6, 0.0  ;;  %v996_v6 = vsel %vm976_vm1, %v1845_v14, 0 }
 0x129   : > { %v902_v12 = vmax.f32 %v722_v8, 0.0 }
 0x12a   : > { %v955_v13 = vpack.c.bf16 %v904_v10, %v903_v9 }
 0x12b   : > { %v954_v16 = vpack.c.bf16 %v902_v12, %v901_v11  ;;  %v1460_v17 = vpop.f32.mrb[28].mxu0 }
 0x12c   : > { %v743_v18 = vadd.f32 %v1460_v17, %v1825_v37  ;;  %v734_v19 = vpop.f32.mrb[29].mxu0 }
 0x12d   : > { %v735_v50 = vadd.f32 %v1825_v37, %v734_v19  ;;  %v1461_v20 = vpop.f32.mrb[30].mxu0 }
 0x12e   : > { %v746_v22 = vadd.f32 %v1461_v20, %v1825_v37  ;;  %v737_v23 = vpop.f32.mrb[31].mxu0  ;;  %1391 = vmatpush3.bf16.xpose.msra.mxu1 %v987_v21  ;;  %v907_v25 = vmax.f32 %v743_v18, 0.0  ;;  %v999_v21 = vsel %vm976_vm1, %v1855_v29, 0 }
 0x12f   : > { %v738_v24 = vadd.f32 %v1825_v37, %v737_v23  ;;  %1497 = vmatprep.subr.msk.bf16.mxu1 %vm976_vm1, %v953_v61  ;;  %v905_v27 = vmax.f32 %v735_v50, 0.0 }
 0x130   : > { %v908_v26 = vmax.f32 %v746_v22, 0.0 }
 0x131   : > { %v906_v30 = vmax.f32 %v738_v24, 0.0 }
 0x132   : > { %v1882_v31 = vpack.c.bf16 %v908_v26, %v907_v25 }
 0x133   : > { %v956_v32 = vpack.c.bf16 %v906_v30, %v905_v27  ;;  %v1464_v33 = vpop.f32.mrb[32].mxu0 }
 0x134   : > { %v759_v34 = vadd.f32 %v1464_v33, %v1825_v37  ;;  %v750_v35 = vpop.f32.mrb[33].mxu0 }
 0x135   : > { %v751_v1 = vadd.f32 %v1825_v37, %v750_v35  ;;  %v1465_v38 = vpop.f32.mrb[34].mxu0 }
 0x136   : > { %v762_v40 = vadd.f32 %v1465_v38, %v1825_v37  ;;  %v753_v41 = vpop.f32.mrb[35].mxu0  ;;  %1393 = vmatpush3.bf16.xpose.msra.mxu1 %v990_v39  ;;  %v911_v43 = vmax.f32 %v759_v34, 0.0  ;;  %v1002_v39 = vsel %vm976_vm1, %v1853_v28, 0 }
 0x137   : > { %v754_v42 = vadd.f32 %v1825_v37, %v753_v41  ;;  %1498 = vmatprep.subr.msk.bf16.mxu1 %vm976_vm1, %v954_v16  ;;  %v909_v45 = vmax.f32 %v751_v1, 0.0 }
 0x138   : > { %v912_v44 = vmax.f32 %v762_v40, 0.0 }
 0x139   : > { %v910_v46 = vmax.f32 %v754_v42, 0.0 }
 0x13a   : > { %v1891_v47 = vpack.c.bf16 %v912_v44, %v911_v43 }
 0x13b   : > { %v1893_v48 = vpack.c.bf16 %v910_v46, %v909_v45  ;;  %v1468_v49 = vpop.f32.mrb[36].mxu0 }
 0x13c   : > { %v775_v51 = vadd.f32 %v1468_v49, %v1825_v37  ;;  %v766_v0 = vpop.f32.mrb[37].mxu0 }
 0x13d   : > { %v767_v53 = vadd.f32 %v1825_v37, %v766_v0  ;;  %v1469_v54 = vpop.f32.mrb[38].mxu0  ;;  %v1029_v28 = vsel %vm976_vm1, %v1893_v48, 0 }
 0x13e   : > { %v778_v56 = vadd.f32 %v1469_v54, %v1825_v37  ;;  %v769_v57 = vpop.f32.mrb[39].mxu0  ;;  %1395 = vmatpush3.bf16.xpose.msra.mxu1 %v993_v55  ;;  %v915_v59 = vmax.f32 %v775_v51, 0.0 }
 0x13f   : > { %v770_v58 = vadd.f32 %v1825_v37, %v769_v57  ;;  %1499 = vmatprep.subr.msk.bf16.mxu1 %vm976_vm1, %v955_v13  ;;  %v913_v61 = vmax.f32 %v767_v53, 0.0 }
 0x140   : > { %v916_v60 = vmax.f32 %v778_v56, 0.0 }
 0x141   : > { %v914_v62 = vmax.f32 %v770_v58, 0.0 }
 0x142   : > { %v1902_v63 = vpack.c.bf16 %v916_v60, %v915_v59 }
 0x143   : > { %v1904_v2 = vpack.c.bf16 %v914_v62, %v913_v61  ;;  %v1472_v3 = vpop.f32.mrb[40].mxu0 }
 0x144   : > { %v791_v52 = vadd.f32 %v1472_v3, %v1825_v37  ;;  %v782_v15 = vpop.f32.mrb[41].mxu0 }
 0x145   : > { %v783_v4 = vadd.f32 %v1825_v37, %v782_v15  ;;  %v1473_v5 = vpop.f32.mrb[42].mxu0 }
 0x146   : > { %v794_v7 = vadd.f32 %v1473_v5, %v1825_v37  ;;  %v785_v8 = vpop.f32.mrb[43].mxu0  ;;  %1397 = vmatpush3.bf16.xpose.msra.mxu1 %v996_v6  ;;  %v919_v10 = vmax.f32 %v791_v52, 0.0  ;;  %v1032_v5 = vsel %vm976_vm1, %v1891_v47, 0 }
 0x147   : > { %v786_v9 = vadd.f32 %v1825_v37, %v785_v8  ;;  %1500 = vmatprep.subr.msk.bf16.mxu1 %vm976_vm1, %v956_v32  ;;  %v917_v12 = vmax.f32 %v783_v4, 0.0 }
 0x148   : > { %v920_v11 = vmax.f32 %v794_v7, 0.0 }
 0x149   : > { %v918_v13 = vmax.f32 %v786_v9, 0.0 }
 0x14a   : > { %v1913_v16 = vpack.c.bf16 %v920_v11, %v919_v10 }
 0x14b   : > { %v1915_v17 = vpack.c.bf16 %v918_v13, %v917_v12  ;;  %v1476_v18 = vpop.f32.mrb[44].mxu0 }
 0x14c   : > { %v807_v19 = vadd.f32 %v1476_v18, %v1825_v37  ;;  %v798_v14 = vpop.f32.mrb[45].mxu0 }
 0x14d   : > { %v799_v50 = vadd.f32 %v1825_v37, %v798_v14  ;;  %v1477_v20 = vpop.f32.mrb[46].mxu0 }
 0x14e   : > { %v810_v22 = vadd.f32 %v1477_v20, %v1825_v37  ;;  %v801_v23 = vpop.f32.mrb[47].mxu0  ;;  %1399 = vmatpush3.bf16.xpose.msra.mxu1 %v999_v21  ;;  %v923_v25 = vmax.f32 %v807_v19, 0.0  ;;  %v1035_v21 = vsel %vm976_vm1, %v1904_v2, 0  ;;  %v1038_v2 = vsel %vm976_vm1, %v1902_v63, 0 }
 0x14f   : > { %v802_v24 = vadd.f32 %v1825_v37, %v801_v23  ;;  %1501 = vmatprep.subr.msk.bf16.mxu1 %vm976_vm1, %v1882_v31  ;;  %v921_v27 = vmax.f32 %v799_v50, 0.0 }
 0x150   : > { %v924_v26 = vmax.f32 %v810_v22, 0.0 }
 0x151   : > { %v922_v30 = vmax.f32 %v802_v24, 0.0 }
 0x152   : > { %v1925_v32 = vpack.c.bf16 %v924_v26, %v923_v25 }
 0x153   : > { %v1927_v33 = vpack.c.bf16 %v922_v30, %v921_v27  ;;  %v1480_v34 = vpop.f32.mrb[48].mxu0 }
 0x154   : > { %v823_v29 = vadd.f32 %v1480_v34, %v1825_v37  ;;  %v814_v35 = vpop.f32.mrb[49].mxu0  ;;  %v1050_v63 = vsel %vm976_vm1, %v1925_v32, 0 }
 0x155   : > { %v815_v1 = vadd.f32 %v1825_v37, %v814_v35  ;;  %v1481_v38 = vpop.f32.mrb[50].mxu0 }
 0x156   : > { %v826_v31 = vadd.f32 %v1481_v38, %v1825_v37  ;;  %v817_v40 = vpop.f32.mrb[51].mxu0  ;;  %1401 = vmatpush3.bf16.xpose.msra.mxu1 %v1002_v39  ;;  %v927_v42 = vmax.f32 %v823_v29, 0.0  ;;  %v1041_v38 = vsel %vm976_vm1, %v1915_v17, 0  ;;  %v1044_v39 = vsel %vm976_vm1, %v1913_v16, 0 }
 0x157   : > { %v818_v41 = vadd.f32 %v1825_v37, %v817_v40  ;;  %v925_v44 = vmax.f32 %v815_v1, 0.0  ;;  %v975_v17 = vstv %s974_s6 }
 0x158   : > { %v928_v43 = vmax.f32 %v826_v31, 0.0 }
 0x159   : > { %v926_v45 = vmax.f32 %v818_v41, 0.0 }
 0x15a   : > { %v967_v46 = vpack.c.bf16 %v928_v43, %v927_v42 }
 0x15b   : > { %v966_v49 = vpack.c.bf16 %v926_v45, %v925_v44  ;;  %v1484_v51 = vpop.f32.mrb[52].mxu0  ;;  %v1650_v44 = vmov 1966171168  }
 0x15c   : > { %v839_v0 = vadd.f32 %v1484_v51, %v1825_v37  ;;  %v830_v53 = vpop.f32.mrb[53].mxu0  ;;  %v1165_v45 = vunpack.c.l.s4 %v1650_v44 }
 0x15d   : > { %1403 = vmatmul.mubr.msk.bf16.vlgmr.msra.gmra.mrb[0].mxu1 %vm976_vm1, %v1818_v36  ;;  %1502 = vmatprep.subr.msk.bf16.mxu1 %vm976_vm1, %v966_v49  ;;  %v831_v54 = vadd.f32 %v1825_v37, %v830_v53  ;;  %v1485_v55 = vpop.f32.mrb[54].mxu0 }
 0x15e   : > { %1405 = vmatpush3.bf16.xpose.msra.mxu1 %v1029_v28  ;;  %v931_v56 = vmax.f32 %v839_v0, 0.0  ;;  %v842_v57 = vadd.f32 %v1485_v55, %v1825_v37  ;;  %v833_v58 = vpop.f32.mrb[55].mxu0  ;;  %1420 = vmatprep.mubr.msk.bf16.mxu1 %vm976_vm1, %v1818_v36  ;;  %v1166_v49 = vunpack.c.0.s8 %v1165_v45 }
 0x15f   : > { %1503 = vmatprep.subr.msk.bf16.mxu1 %vm976_vm1, %v967_v46  ;;  %v929_v59 = vmax.f32 %v831_v54, 0.0  ;;  %v834_v60 = vadd.f32 %v1825_v37, %v833_v58  ;;  %v1167_v46 = vlaneseq }
 0x160   : > { %v932_v61 = vmax.f32 %v842_v57, 0.0 }
 0x161   : > { %v930_v62 = vmax.f32 %v834_v60, 0.0  ;;  %v1168_v51 = vshrl.u32 %v1167_v46, 7  ;;  %vm1189_vm2 = vcmp.lt.s32.totalorder %v1167_v46, 512 }
 0x162   : > { %v969_v3 = vpack.c.bf16 %v932_v61, %v931_v56 }
 0x163   : > { %v968_v48 = vpack.c.bf16 %v930_v62, %v929_v59  ;;  %v1488_v52 = vpop.f32.mrb[56].mxu0 }
 0x164   : > { %v855_v15 = vadd.f32 %v1488_v52, %v1825_v37  ;;  %v846_v4 = vpop.f32.mrb[57].mxu0 }
 0x165   : > { %v847_v6 = vadd.f32 %v1825_v37, %v846_v4  ;;  %v1489_v7 = vpop.f32.mrb[58].mxu0 }
 0x166   : > { %1407 = vmatpush3.bf16.xpose.msra.mxu1 %v1032_v5  ;;  %v935_v8 = vmax.f32 %v855_v15, 0.0  ;;  %v858_v9 = vadd.f32 %v1489_v7, %v1825_v37  ;;  %v849_v10 = vpop.f32.mrb[59].mxu0 }
 0x167   : > { %1504 = vmatprep.subr.msk.bf16.mxu1 %vm976_vm1, %v968_v48  ;;  %v933_v11 = vmax.f32 %v847_v6, 0.0  ;;  %v850_v12 = vadd.f32 %v1825_v37, %v849_v10 }
 0x168   : > { %v936_v13 = vmax.f32 %v858_v9, 0.0 }
 0x169   : > { %v934_v18 = vmax.f32 %v850_v12, 0.0 }
 0x16a   : > { %v971_v19 = vpack.c.bf16 %v936_v13, %v935_v8 }
 0x16b   : > { %v970_v14 = vpack.c.bf16 %v934_v18, %v933_v11  ;;  %v1492_v50 = vpop.f32.mrb[60].mxu0 }
 0x16c   : > { %v871_v47 = vadd.f32 %v1492_v50, %v1825_v37  ;;  %v862_v20 = vpop.f32.mrb[61].mxu0 }
 0x16d   : > { %v863_v22 = vadd.f32 %v1825_v37, %v862_v20  ;;  %v1493_v23 = vpop.f32.mrb[62].mxu0 }
 0x16e   : > { %1409 = vmatpush3.bf16.xpose.msra.mxu1 %v1035_v21  ;;  %v939_v24 = vmax.f32 %v871_v47, 0.0  ;;  %v874_v25 = vadd.f32 %v1493_v23, %v1825_v37  ;;  %v865_v26 = vpop.f32.mrb[63].mxu0 }
 0x16f   : > { %1505 = vmatprep.subr.msk.bf16.mxu1 %vm976_vm1, %v969_v3  ;;  %v937_v27 = vmax.f32 %v863_v22, 0.0  ;;  %v866_v30 = vadd.f32 %v1825_v37, %v865_v26  ;;  %v1047_v37 = vsel %vm976_vm1, %v1927_v33, 0 }
 0x170   : > { %v940_v34 = vmax.f32 %v874_v25, 0.0 }
 0x171   : > { %v938_v29 = vmax.f32 %v866_v30, 0.0 }
 0x172   : > { %v973_v35 = vpack.c.bf16 %v940_v34, %v939_v24 }
 0x173   : > { %v972_v1 = vpack.c.bf16 %v938_v29, %v937_v27 }
 0x176   : > { %1411 = vmatpush3.bf16.xpose.msra.mxu1 %v1038_v2 }
 0x177   : > { %1506 = vmatprep.subr.msk.bf16.mxu1 %vm976_vm1, %v970_v14 }
 0x17e   : > { %1413 = vmatpush3.bf16.xpose.msra.mxu1 %v1041_v38 }
 0x17f   : > { %1507 = vmatprep.subr.msk.bf16.mxu1 %vm976_vm1, %v971_v19 }
 0x186   : > { %1415 = vmatpush3.bf16.xpose.msra.mxu1 %v1044_v39 }
 0x187   : > { %1508 = vmatprep.subr.msk.bf16.mxu1 %vm976_vm1, %v972_v1 }
 0x18e   : > { %1417 = vmatpush3.bf16.xpose.msra.mxu1 %v1047_v37 }
 0x18f   : > { %1509 = vmatprep.subr.msk.bf16.mxu1 %vm976_vm1, %v973_v35 }
 0x196   : > { %1419 = vmatpush3.bf16.xpose.msra.mxu1 %v1050_v63 }
 0x19d   : > { %1421 = vmatmul.mubr.msk.bf16.vlgmr.msra.gmra.mrb[4].mxu1 %vm976_vm1, %v1818_v36  ;;  %v1169_v36 = vsub.s32 %v1166_v49, %v1168_v51 }
 0x230   : > { %v1110_v16 = vpop.f32.mrb[0].mxu1 }
 0x231   : > { %v1111_v31 = vadd.f32 %v1110_v16, %v975_v17  ;;  %v1112_v40 = vpop.f32.mrb[1].mxu1 }
 0x232   : > { %v1113_v41 = vadd.f32 %v1112_v40, %v975_v17  ;;  %v1114_v42 = vpop.f32.mrb[2].mxu1 }
 0x233   : > { %v1115_v43 = vpop.f32.mrb[3].mxu1 }
 0x234   : > { %v1162_v33 = vcombine.low %v1111_v31, %v1113_v41 }
 0x236   : > { %v1170_v57 = vrot.slane %v1162_v33, %v1169_v36 }
 0x270   : > { %v1151_v32 = vpop.f32.mrb[4].mxu1 }
 0x271   : > { %v1152_v0 = vadd.f32 %v1151_v32, %v975_v17  ;;  %v1153_v53 = vpop.f32.mrb[5].mxu1 }
 0x272   : > { %v1154_v28 = vadd.f32 %v1153_v53, %v975_v17  ;;  %v1155_v54 = vpop.f32.mrb[6].mxu1 }
 0x273   : > { %v1156_v55 = vpop.f32.mrb[7].mxu1 }
 0x274   : > { %v1163_v56 = vcombine.low %v1152_v0, %v1154_v28 }
 0x276   : > { %v1177_v58 = vrot.slane %v1163_v56, %v1169_v36 }
 0x278   : > { %v1178_v59 = vcombine.low %v1170_v57, %v1177_v58 }
 0x27a   : > { %v1185_v60 = vrot.slane %v1178_v59, %v1169_v36 }
 0x27c   : > { %1191 = vst.msk [vmem:[%s219_s10] sm:$0xf] %vm1189_vm2, %v1185_v60 }
 0x27d   : > { %1599 = shalt.err (!%p1596_p3)
}
 0x27e   : > { %s1600_s8 = scalar_lea.hbm %s1982_s14, 64  ;;  %s1604_s26 = scalar_lea.hbm %s2029_s5, 128 }
 0x27f   : > { %p1601_p4 = scmp.ne.s32.totalorder %s1982_s14, %s1600_s8  ;;  %p1605_p9 = scmp.lt.u32.totalorder %s1982_s14, %s2029_s5 }
 0x280   : > { %p1606_p10 = scmp.lt.u32.totalorder %s1604_s26, %s1600_s8  ;;  %p1608_p12 = scmp.lt.u32.totalorder %s1600_s8, %s1982_s14 }
 0x281   : > { %p1602_p7 = pnand %p1601_p4, %p1720_p5 }
 0x282   : > { %p1607_p11 = por %p1606_p10, %p1605_p9 }
 0x283   : > { %p1603_p8 = pneg %p1602_p7 }
 0x284   : > { %p1609_p13 = por %p1608_p12, %p1607_p11 }
 0x286   : > { %p1610_p0 = pnand %p1609_p13, %p1603_p8 }
 0x288   : > { %1613 = shalt.err (!%p1610_p0)
}
 0x289   : > { %1510 = dma.vmem_to_hbm [thread:$0]  (%p1720_p5), %s1984_s11, 64, %s1982_s14, %s1193_s15  }
 0x28a PF: > { %p1516_p1 = scmp.ge.s32.totalorder %s1648_s23, 2  ;;  %s1219_s7 = sand.u32 1, %s1636_s20  }
 0x28b   : > { %s1220_s9 = scalar_lea.sflag [#allocation4], %s1219_s7 }
 0x28c   : > { %p1513_p2 = pnand %p1516_p1, %p1724_p6 }
 0x28e   : > { %1631 = dma.done.wait (!%p1513_p2), %s1220_s9, 64  }
 0x28f   : > { %1633 = vsyncadd (!%p1513_p2), %s1220_s9, 4294967232  ;;  %p16_p3 = scmp.ge.s32.totalorder %s1708_s25, 4   ;;  %s2032_s20 = smov %s1640_s21 }
 0x290   : > { %s2033_s21 = smov %s1644_s22  ;;  %s2034_s22 = smov %s1718_s28 }
 0x291   : > { %s2035_s23 = smov %s1708_s25  ;;  %18 = sbr.rel (!%p16_p3) target bundleno = 5 (0x5), region = 75 }
 0x298   :  { %1225 = vsyncpa [#allocation4], 1 }
 0x299   :  { %1227 = vsyncpa [#allocation4 + $0x1], 1 }

</bundles_post_ra>
